<compile_context>
chip_gen: v6e
topology: v6e:2x2x1
jax: 0.10.0
libtpu: 0.0.40
codegen_flags: <defaults>
</compile_context>

<pallas_src>
import math

import jax
import jax.numpy as jnp
from jax.experimental import pallas as pl
from jax.experimental.pallas import tpu as pltpu

INIT_TAU = 0.07
CLAMP = 4.6051
EPS = 1e-12     # F.normalize eps
TINY = 1e-30    # floor before log() (guards exp underflow of a full row/col)


def _ntxent_tile_kernel(scale_ref, v_ref, t_ref,
                        colsum_ref, rowlse_ref, diag_ref):
    """One (TB, B) logits panel: row LSE, diagonal and column partial sums."""
    i = pl.program_id(0)
    TB = v_ref.shape[0]
    B = t_ref.shape[0]
    scale = scale_ref[0]                       # exp(clamp(tau)), precomputed

    # Normalize this v row-tile right after its DMA lands (rsqrt -> EUP slot)
    # and fold the scale in: a (TB, D) multiply instead of a (TB, B) one.
    v = v_ref[...].astype(jnp.float32)
    inv_v = jax.lax.rsqrt(jnp.maximum(
        jnp.sum(v * v, axis=-1, keepdims=True), EPS * EPS))
    v_s = v * (inv_v * scale)                  # (TB, D) normalized + scaled
    v_mx = v_s.astype(t_ref.dtype)             # MXU operand dtype (bf16 def.)

    t_n = t_ref[...]                           # (B, D) pre-normalized, MXU dt

    # (TB, B) logits panel, already scaled; contraction on the lane dim.
    panel = jax.lax.dot_general(
        v_mx, t_n, dimension_numbers=(((1,), (1,)), ((), ())),
        preferred_element_type=jnp.float32)

    # Diagonal logits for this tile (rows [i*TB, (i+1)*TB) of t), computed
    # from the same operands/dtype as the panel — O(TB*D), no iota/mask.
    row0 = pl.multiple_of(i * TB, TB)
    t_rows = t_ref[pl.ds(row0, TB), :]         # (TB, D)
    diag = jnp.sum(v_mx.astype(jnp.float32) * t_rows.astype(jnp.float32),
                   axis=-1, keepdims=True)     # (TB, 1)

    # Constant-shift softmax statistics: logits are bounded by +/- scale, so a
    # single exp pass serves both the row and the column reductions.
    # TODO(synk): at the clamp maximum (scale ~ 100) a row whose cosines are
    # all ~ -1 would underflow to 0; the TINY floor keeps it finite.
    p = jnp.exp(panel - scale)                                     # (TB, B)
    row_sum = jnp.sum(p, axis=-1, keepdims=True)                   # (TB, 1)
    row_lse = scale + jnp.log(jnp.maximum(row_sum, TINY))          # (TB, 1)

    rowlse_ref[...] = jnp.sum(row_lse, keepdims=True).reshape(1, 1, 1)
    diag_ref[...] = jnp.sum(diag, keepdims=True).reshape(1, 1, 1)
    colsum_ref[...] = jnp.sum(p, axis=0, keepdims=True).reshape(1, 1, B)


def _vmem_capacity_bytes():
    try:
        return int(pltpu.get_tpu_info().vmem_capacity_bytes)
    except Exception:
        return None


def _pick_row_tile(B, D, t_itemsize, vmem_budget):
    """Largest row tile whose working set fits the VMEM budget.

    Candidates keep the MXU fully fed: 256 matches the v6e/v7x 256-wide MXU,
    128 is already enough for v5e's 128x128 MXU.
    """
    cands = [tb for tb in (256, 128, 64, 32, 16, 8) if B % tb == 0]
    if not cands:
        return B                               # single full-size tile
    t_resident = B * D * t_itemsize            # normalized t, MXU dtype
    for tb in cands:
        need = (t_resident
                + 2 * tb * D * 4               # double-buffered v tile (f32)
                + 3 * tb * B * 4)              # panel + exp/reduce temporaries
        if need <= 0.9 * vmem_budget:
            return tb
    return cands[-1]


def learnable_ntxent_loss(v_emb, t_emb, tau, *, mxu_dtype=jnp.bfloat16,
                          row_tile=None):
    """Pallas implementation of LearnableNTXentLoss.forward(v_emb, t_emb).

    v_emb, t_emb: (B, D) float32.  tau: (1,) float32 parameter.
    mxu_dtype: dtype fed to the MXU (bf16 default = fast path everywhere;
               accumulation and softmax statistics are always f32).
    Returns scalar float32 loss.
    """
    # TODO(synk): the `logits is not None` branch of the PyTorch forward is
    # not wired up here; only the embedding path (the hot path) is implemented.
    B, D = v_emb.shape
    assert t_emb.shape == (B, D)

    # Clamped learnable temperature, computed once and reused by kernel +
    # epilogue (mirrors torch.clamp(tau.data, 0, clamp) followed by tau.exp()).
    scale = jnp.exp(jnp.clip(tau[0].astype(jnp.float32), 0.0, CLAMP))
    scale_arr = jnp.reshape(scale, (1,))

    # Pre-normalize t once (one XLA pass, one HBM read) and hand it to the
    # kernel already in the MXU dtype: exactly ONE (B, D) copy of t is ever
    # VMEM-resident and there is no per-step re-cast.
    # TODO(synk): for very large B*D (t_n alone near the VMEM budget, e.g. on
    # v7x) t should be column-tiled via a 2-D grid instead of kept resident.
    t32 = t_emb.astype(jnp.float32)
    t_n = (t32 / jnp.maximum(
        jnp.linalg.norm(t32, axis=1, keepdims=True), EPS)).astype(mxu_dtype)

    cap = _vmem_capacity_bytes()
    vmem_limit = min(int(0.85 * cap), 64 << 20) if cap else None
    budget = vmem_limit if vmem_limit else (32 << 20)

    TB = (_pick_row_tile(B, D, jnp.dtype(mxu_dtype).itemsize, budget)
          if row_tile is None else row_tile)
    assert B % TB == 0, (B, TB)
    n_tiles = B // TB

    compiler_kwargs = dict(dimension_semantics=("parallel",))
    if vmem_limit is not None:
        compiler_kwargs["vmem_limit_bytes"] = vmem_limit

    col_part, row_part, diag_part = pl.pallas_call(
        _ntxent_tile_kernel,
        out_shape=(
            jax.ShapeDtypeStruct((n_tiles, 1, B), jnp.float32),  # col partials
            jax.ShapeDtypeStruct((n_tiles, 1, 1), jnp.float32),  # sum row LSE
            jax.ShapeDtypeStruct((n_tiles, 1, 1), jnp.float32),  # sum diag
        ),
        grid=(n_tiles,),
        in_specs=[
            pl.BlockSpec(memory_space=pltpu.MemorySpace.SMEM),   # scale (1,)
            pl.BlockSpec((TB, D), lambda i: (i, 0)),             # v row tile
            pl.BlockSpec(memory_space=pltpu.MemorySpace.VMEM),   # t_n resident
        ],
        out_specs=[
            pl.BlockSpec((1, 1, B), lambda i: (i, 0, 0)),
            pl.BlockSpec((1, 1, 1), lambda i: (i, 0, 0)),
            pl.BlockSpec((1, 1, 1), lambda i: (i, 0, 0)),
        ],
        compiler_params=pltpu.CompilerParams(**compiler_kwargs),
    )(scale_arr, v_emb.astype(jnp.float32), t_n)

    # Tiny O(B) epilogue combining the per-tile partials (keeps every tile
    # independent -> megacore-parallel on v7x).
    col_sum = jnp.sum(col_part[:, 0, :], axis=0)                   # (B,)
    lse_col_sum = jnp.sum(scale + jnp.log(jnp.maximum(col_sum, TINY)))
    row_lse_sum = jnp.sum(row_part)
    diag_sum = jnp.sum(diag_part)
    loss_v = (row_lse_sum - diag_sum) / B
    loss_t = (lse_col_sum - diag_sum) / B
    return 0.5 * (loss_v + loss_t)


def _reference(v_emb, t_emb, tau):
    """Pure-JAX reference (mirrors the PyTorch module)."""
    tau_c = jnp.clip(tau[0], 0.0, CLAMP)
    scale = jnp.exp(tau_c)
    v = v_emb / jnp.maximum(jnp.linalg.norm(v_emb, axis=1, keepdims=True), EPS)
    t = t_emb / jnp.maximum(jnp.linalg.norm(t_emb, axis=1, keepdims=True), EPS)
    logits = (v @ t.T) * scale
    B = logits.shape[0]
    labels = jnp.arange(B)
    lse_v = jax.scipy.special.logsumexp(logits, axis=1)
    lse_t = jax.scipy.special.logsumexp(logits.T, axis=1)
    diag = logits[labels, labels]
    loss_v = jnp.mean(lse_v - diag)
    loss_t = jnp.mean(lse_t - diag)
    return 0.5 * (loss_v + loss_t)


if __name__ == "__main__":
    key = jax.random.PRNGKey(0)
    k_v, k_t, k_v2, k_t2 = jax.random.split(key, 4)

    # Deterministic parameter init exactly as in __init__: tau = log(1/init_tau)
    tau = jnp.array([math.log(1.0 / INIT_TAU)], dtype=jnp.float32)

    # Case 1: single-tile grid (B=8, D=32), f32 MXU path, tight tolerance.
    B, D = 8, 32
    v_emb = jax.random.normal(k_v, (B, D), dtype=jnp.float32)
    t_emb = jax.random.normal(k_t, (B, D), dtype=jnp.float32)
    loss = jax.block_until_ready(
        learnable_ntxent_loss(v_emb, t_emb, tau, mxu_dtype=jnp.float32))
    ref = jax.block_until_ready(_reference(v_emb, t_emb, tau))
    assert jnp.allclose(loss, ref, rtol=1e-4, atol=1e-4), (loss, ref)

    # Case 2: multi-tile grid (B=16, row_tile=8 -> 2 grid steps) exercises the
    # per-tile partial statistics + epilogue combine path, f32 MXU.
    B2, D2 = 16, 32
    v2 = jax.random.normal(k_v2, (B2, D2), dtype=jnp.float32)
    t2 = jax.random.normal(k_t2, (B2, D2), dtype=jnp.float32)
    loss2 = jax.block_until_ready(
        learnable_ntxent_loss(v2, t2, tau, row_tile=8, mxu_dtype=jnp.float32))
    ref2 = jax.block_until_ready(_reference(v2, t2, tau))
    assert jnp.allclose(loss2, ref2, rtol=1e-4, atol=1e-4), (loss2, ref2)

    # Case 3: default bf16 MXU operands (f32 accumulation) — the throughput
    # path on all generations; checked against the f32 reference loosely.
    loss_bf16 = jax.block_until_ready(
        learnable_ntxent_loss(v2, t2, tau, row_tile=8))
    assert jnp.allclose(loss_bf16, ref2, rtol=0.0, atol=0.25), (loss_bf16, ref2)

    print("KERNEL_OK")
</pallas_src>

<mosaic_0001>
module attributes {stable_mosaic.version = 11 : i64} {
  func.func @_ntxent_tile_kernel(%arg0: i32, %arg1: memref<1xf32, #tpu.memory_space<smem>>, %arg2: memref<8x32xf32, #tpu.memory_space<vmem>>, %arg3: memref<8x32xf32, #tpu.memory_space<vmem>>, %arg4: memref<1x1x8xf32, #tpu.memory_space<vmem>>, %arg5: memref<1x1x1xf32, #tpu.memory_space<vmem>>, %arg6: memref<1x1x1xf32, #tpu.memory_space<vmem>>) attributes {dimension_semantics = [#tpu.dimension_semantics<parallel>], iteration_bounds = array<i64: 1>, scalar_prefetch = 0 : i64, scratch_operands = 0 : i64, tpu.core_type = #tpu.core_type<tc>, window_params = [{transform_indices = @transform_0, window_bounds = array<i64: 1>}, {transform_indices = @transform_1, window_bounds = array<i64: 8, 32>}, {pipeline_mode = #tpu.pipeline_mode<synchronous>, transform_indices = @transform_2, window_bounds = array<i64: 8, 32>}, {transform_indices = @transform_3, window_bounds = array<i64: 1, 1, 8>}, {transform_indices = @transform_4, window_bounds = array<i64: 1, 1, 1>}, {transform_indices = @transform_5, window_bounds = array<i64: 1, 1, 1>}]} {
    %c0 = arith.constant 0 : index
    %0 = memref.load %arg1[%c0] : memref<1xf32, #tpu.memory_space<smem>>
    %c0_0 = arith.constant 0 : index
    %c0_1 = arith.constant 0 : index
    %1 = vector.load %arg2[%c0_0, %c0_1] : memref<8x32xf32, #tpu.memory_space<vmem>>, vector<8x32xf32>
    %2 = arith.mulf %1, %1 : vector<8x32xf32>
    %cst = arith.constant dense<0.000000e+00> : vector<8xf32>
    %3 = vector.multi_reduction <add>, %2, %cst [1] : vector<8x32xf32> to vector<8xf32>
    %4 = vector.shape_cast %3 : vector<8xf32> to vector<8x1xf32>
    %cst_2 = arith.constant 1.000000e-24 : f32
    %5 = vector.broadcast %cst_2 : f32 to vector<8x1xf32>
    %6 = arith.maximumf %4, %5 : vector<8x1xf32>
    %7 = math.rsqrt %6 : vector<8x1xf32>
    %8 = vector.broadcast %0 : f32 to vector<8x1xf32>
    %9 = arith.mulf %7, %8 : vector<8x1xf32>
    %10 = vector.broadcast %9 : vector<8x1xf32> to vector<8x32xf32>
    %11 = arith.mulf %1, %10 : vector<8x32xf32>
    %c0_3 = arith.constant 0 : index
    %c0_4 = arith.constant 0 : index
    %12 = vector.load %arg3[%c0_3, %c0_4] : memref<8x32xf32, #tpu.memory_space<vmem>>, vector<8x32xf32>
    %cst_5 = arith.constant dense<0.000000e+00> : vector<8x8xf32>
    %13 = tpu.matmul %11, %12, %cst_5 {dimension_numbers = #tpu.dot_dimension_numbers<[1], [1], [0], [0], [0, 0, 1, 0], [], []>} : vector<8x32xf32>, vector<8x32xf32>, vector<8x8xf32> -> vector<8x8xf32>
    %c8_i32 = arith.constant 8 : i32
    %14 = arith.muli %arg0, %c8_i32 : i32
    %15 = tpu.assume_multiple %14, 8 : i32
    %16 = arith.index_cast %15 : i32 to index
    %c0_6 = arith.constant 0 : index
    %17 = vector.load %arg3[%16, %c0_6] : memref<8x32xf32, #tpu.memory_space<vmem>>, vector<8x32xf32>
    %18 = arith.mulf %11, %17 : vector<8x32xf32>
    %cst_7 = arith.constant dense<0.000000e+00> : vector<8xf32>
    %19 = vector.multi_reduction <add>, %18, %cst_7 [1] : vector<8x32xf32> to vector<8xf32>
    %20 = vector.shape_cast %19 : vector<8xf32> to vector<8x1xf32>
    %21 = vector.broadcast %0 : f32 to vector<8x8xf32>
    %22 = arith.subf %13, %21 : vector<8x8xf32>
    %23 = math.exp %22 : vector<8x8xf32>
    %cst_8 = arith.constant dense<0.000000e+00> : vector<8xf32>
    %24 = vector.multi_reduction <add>, %23, %cst_8 [1] : vector<8x8xf32> to vector<8xf32>
    %25 = vector.shape_cast %24 : vector<8xf32> to vector<8x1xf32>
    %cst_9 = arith.constant 1.000000e-30 : f32
    %26 = vector.broadcast %cst_9 : f32 to vector<8x1xf32>
    %27 = arith.maximumf %25, %26 : vector<8x1xf32>
    %28 = math.log %27 : vector<8x1xf32>
    %29 = vector.broadcast %0 : f32 to vector<8x1xf32>
    %30 = arith.addf %29, %28 : vector<8x1xf32>
    %31 = vector.shape_cast %30 : vector<8x1xf32> to vector<1x8x1xf32>
    %cst_10 = arith.constant dense<0.000000e+00> : vector<1xf32>
    %32 = vector.multi_reduction <add>, %31, %cst_10 [1, 2] : vector<1x8x1xf32> to vector<1xf32>
    %33 = vector.shape_cast %32 : vector<1xf32> to vector<1x1x1xf32>
    %34 = vector.extract %33[0, 0, 0] : f32 from vector<1x1x1xf32>
    %35 = vector.broadcast %34 : f32 to vector<1x1xf32>
    %36 = vector.shape_cast %35 : vector<1x1xf32> to vector<1x1x1xf32>
    %c0_11 = arith.constant 0 : index
    %c0_12 = arith.constant 0 : index
    %c0_13 = arith.constant 0 : index
    %37 = vector.load %arg5[%c0_11, %c0_12, %c0_13] : memref<1x1x1xf32, #tpu.memory_space<vmem>>, vector<1x1x1xf32>
    tpu.vector_store %arg5[%c0_11, %c0_12, %c0_13], %36 {strides = array<i32>} : memref<1x1x1xf32, #tpu.memory_space<vmem>>, vector<1x1x1xf32>,
    %38 = vector.shape_cast %20 : vector<8x1xf32> to vector<1x8x1xf32>
    %cst_14 = arith.constant dense<0.000000e+00> : vector<1xf32>
    %39 = vector.multi_reduction <add>, %38, %cst_14 [1, 2] : vector<1x8x1xf32> to vector<1xf32>
    %40 = vector.shape_cast %39 : vector<1xf32> to vector<1x1x1xf32>
    %41 = vector.extract %40[0, 0, 0] : f32 from vector<1x1x1xf32>
    %42 = vector.broadcast %41 : f32 to vector<1x1xf32>
    %43 = vector.shape_cast %42 : vector<1x1xf32> to vector<1x1x1xf32>
    %c0_15 = arith.constant 0 : index
    %c0_16 = arith.constant 0 : index
    %c0_17 = arith.constant 0 : index
    %44 = vector.load %arg6[%c0_15, %c0_16, %c0_17] : memref<1x1x1xf32, #tpu.memory_space<vmem>>, vector<1x1x1xf32>
    tpu.vector_store %arg6[%c0_15, %c0_16, %c0_17], %43 {strides = array<i32>} : memref<1x1x1xf32, #tpu.memory_space<vmem>>, vector<1x1x1xf32>,
    %cst_18 = arith.constant dense<0.000000e+00> : vector<8xf32>
    %45 = vector.multi_reduction <add>, %23, %cst_18 [0] : vector<8x8xf32> to vector<8xf32>
    %46 = vector.shape_cast %45 : vector<8xf32> to vector<1x8xf32>
    %47 = vector.shape_cast %46 : vector<1x8xf32> to vector<1x1x8xf32>
    %c0_19 = arith.constant 0 : index
    %c0_20 = arith.constant 0 : index
    %c0_21 = arith.constant 0 : index
    %48 = vector.load %arg4[%c0_19, %c0_20, %c0_21] : memref<1x1x8xf32, #tpu.memory_space<vmem>>, vector<1x1x8xf32>
    tpu.vector_store %arg4[%c0_19, %c0_20, %c0_21], %47 {strides = array<i32>} : memref<1x1x8xf32, #tpu.memory_space<vmem>>, vector<1x1x8xf32>,
    return
  }
  func.func @transform_0(%arg0: i32) -> i32 {
    %c0_i32 = arith.constant 0 : i32
    %c0_i32_0 = arith.constant 0 : i32
    return %c0_i32 : i32
  }
  func.func @transform_1(%arg0: i32) -> (i32, i32) {
    %c0_i32 = arith.constant 0 : i32
    %c0_i32_0 = arith.constant 0 : i32
    return %arg0, %c0_i32 : i32, i32
  }
  func.func @transform_2(%arg0: i32) -> (i32, i32) {
    %c0_i32 = arith.constant 0 : i32
    %c0_i32_0 = arith.constant 0 : i32
    %c0_i32_1 = arith.constant 0 : i32
    return %c0_i32, %c0_i32_0 : i32, i32
  }
  func.func @transform_3(%arg0: i32) -> (i32, i32, i32) {
    %c0_i32 = arith.constant 0 : i32
    %c0_i32_0 = arith.constant 0 : i32
    %c0_i32_1 = arith.constant 0 : i32
    return %arg0, %c0_i32, %c0_i32_0 : i32, i32, i32
  }
  func.func @transform_4(%arg0: i32) -> (i32, i32, i32) {
    %c0_i32 = arith.constant 0 : i32
    %c0_i32_0 = arith.constant 0 : i32
    %c0_i32_1 = arith.constant 0 : i32
    return %arg0, %c0_i32, %c0_i32_0 : i32, i32, i32
  }
  func.func @transform_5(%arg0: i32) -> (i32, i32, i32) {
    %c0_i32 = arith.constant 0 : i32
    %c0_i32_0 = arith.constant 0 : i32
    %c0_i32_1 = arith.constant 0 : i32
    return %arg0, %c0_i32, %c0_i32_0 : i32, i32, i32
  }
}

</mosaic_0001>

<bundles_post_ra>
// kernel: tpu_custom_call.1
= control target key start
LH: loop header
LB: loop body
LE: loop exit
PB: predicated region body
PF: predicated region fallthrough
CT: control target
= control target key end

     0   :  { %12 = vsyncpa [#allocation4], 0  ;;  %s423_s0 = inlined_call_operand.<no memory space> [shape: f32[1], index: 0, kind: input, shape index: {}]   ;;  %s424_s1 = inlined_call_operand.hbm [shape: f32[8,32], index: 1, kind: input, shape index: {}]   ;;  %s425_s2 = inlined_call_operand.hbm [shape: f32[8,32], index: 2, kind: input, shape index: {}]   ;;  %s426_s3 = inlined_call_operand.hbm [shape: f32[1,1,8], index: 3, kind: output, shape index: {0}]   ;;  %s427_s4 = inlined_call_operand.hbm [shape: f32[1,1,1], index: 4, kind: output, shape index: {1}]   ;;  %s428_s5 = inlined_call_operand.hbm [shape: f32[1,1,1], index: 5, kind: output, shape index: {2}]  }
   0x1   :  { %13 = vsyncpa [#allocation7], 0 }
   0x2   :  { %14 = vsyncpa [#allocation5], 0 }
   0x3   :  { %15 = vsyncpa [#allocation10], 0  ;;  %s362_s18 = smov [#allocation3]   ;;  %s363_s20 = smov [#allocation6]  }
   0x4   :  { %s24_s19 = sshll.u32 %s362_s18, 4  ;;  %s34_s21 = sshll.u32 %s363_s20, 4  ;;  %s25_s19 = int_to_ptr.vmem [resolvable:$true] %s24_s19  ;;  %s35_s21 = int_to_ptr.vmem [resolvable:$true] %s34_s21 }
   0x5   :  { %s262_s22 = scalar_lea.vmem %s25_s19, 128  ;;  %p267_p1 = scmp.lt.s32.totalorder %s25_s19, %s25_s19 }
   0x6   :  { %p263_p0 = scmp.ne.s32.totalorder %s25_s19, %s262_s22  ;;  %p268_p2 = scmp.lt.s32.totalorder %s262_s22, %s262_s22 }
   0x8   :  { %p269_p3 = por %p268_p2, %p267_p1 }
   0xa   :  { %p270_p4 = pnand %p269_p3, %p263_p0 }
   0xc   :  { %273 = shalt.err (!%p270_p4)
}
   0xd   :  { %27 = dma.hbm_to_vmem [thread:$0]  %s424_s1, 128, %s25_s19, [#allocation4]  }
   0xe   :  { %s282_s25 = scalar_lea.vmem %s35_s21, 128  ;;  %p287_p6 = scmp.lt.s32.totalorder %s35_s21, %s35_s21 }
   0xf   :  { %p283_p5 = scmp.ne.s32.totalorder %s35_s21, %s282_s25  ;;  %p288_p7 = scmp.lt.s32.totalorder %s282_s25, %s282_s25 }
  0x11   :  { %p289_p8 = por %p288_p7, %p287_p6 }
  0x13   :  { %p290_p9 = pnand %p289_p8, %p283_p5 }
  0x15   :  { %293 = shalt.err (!%p290_p9)
}
  0x16   :  { %37 = dma.hbm_to_vmem [thread:$0]  %s425_s2, 128, %s35_s21, [#allocation7]  }
  0x17   :  { %354 = dma.done.wait [#allocation4], 128  }
  0x18   :  { %355 = vsyncadd [#allocation4], 4294967168 }
  0x19   :  { %356 = dma.done.wait [#allocation7], 128  }
  0x1a   :  { %357 = vsyncadd [#allocation7], 4294967168  ;;  %v45_v0 = vld [vmem:[#allocation3] sm:$0xff]  ;;  %vm47_vm0 = vcmask 261120   ;;  %v56_v3 = vld [vmem:[#allocation6] sm:$0xff]  ;;  %v364_v4 = vmov 0.0   ;;  %v53_v7 = vstv %s423_s0 }
  0x1b   :  { %v46_v1 = vmul.f32 %v45_v0, %v45_v0  ;;  %232 = vmatprep.subr.mxu0 %v364_v4  ;;  %vm365_vm1 = vmmov 0   ;;  %vm143_vm2 = vcmask 64512   ;;  %vm151_vm3 = vcmask 7168   ;;  %s366_s0 = smov [#allocation8]  }
  0x1c   :  { %234 = vmatprep.mubr.msk.f32.mxu0 %vm365_vm1, %v364_v4  ;;  %233 = vmatpush3.xpose.msk.msra.mxu0 %vm47_vm0, %v56_v3  ;;  %vm183_vm4 = vcmask 57344   ;;  %s191_s28 = sshll.u32 %s366_s0, 4  ;;  %s192_s28 = int_to_ptr.vmem [resolvable:$true] %s191_s28 }
  0x1d   :  { %v48_v2 = vsel %vm47_vm0, %v46_v1, 0.0  ;;  %s294_s29 = scalar_lea.vmem %s192_s28, 16  ;;  %s298_s30 = scalar_lea.vmem %s192_s28, 32 }
  0x1e   :  { %49 = vadd.xlane.f32.xlu0 %v48_v2  ;;  %p295_p10 = scmp.ne.s32.totalorder %s192_s28, %s294_s29  ;;  %p299_p11 = scmp.lt.s32.totalorder %s192_s28, %s192_s28 }
  0x1f   :  { %p300_p12 = scmp.lt.s32.totalorder %s298_s30, %s294_s29 }
  0x21   :  { %p301_p13 = por %p300_p12, %p299_p11 }
  0x23   :  { %p302_p0 = pnand %p301_p13, %p295_p10 }
  0xa7   :  { %v50_v5 = vpop.xlane.xlu0 %49 }
  0xa8   :  { %v51_v6 = vmax.f32 %v50_v5, 1e-24 }
  0xaa   :  { %248 = vrsqrt.f32 %v51_v6 }
  0xb7   :  { %v249_v8 = vpop.eup %248 }
  0xb8   :  { %v54_v9 = vmul.f32 %v249_v8, %v53_v7 }
  0xba   :  { %v55_v10 = vmul.f32 %v54_v9, %v45_v0 }
  0xbc   :  { %235 = vmatmul.mubr.msk.f32.vlgmr.msra.gmra.mxu0 %vm47_vm0, %v55_v10  ;;  %v136_v11 = vmul.f32 %v56_v3, %v55_v10 }
  0xbe   :  { %v137_v12 = vsel %vm47_vm0, %v136_v11, 0.0 }
  0xbf   :  { %138 = vadd.xlane.f32.xlu1 %v137_v12 }
 0x148   :  { %v139_v19 = vpop.xlane.xlu1 %138 }
 0x149   :  { %v165_v22 = vsel %vm151_vm3, %v139_v19, 0.0 }
 0x17c   :  { %v129_v13 = vpop.f32.mrf.mxu0 }
 0x17d   :  { %v140_v14 = vsub.f32 %v129_v13, %v53_v7 }
 0x17e   :  { %v236_v15 = vpop.f32.mrf.mxu0 }
 0x17f   :  { %v141_v16 = vmul.f32 1.442695, %v140_v14 }
 0x181   :  { %250 = vpow2.f32 %v141_v16 }
 0x18e   :  { %v251_v17 = vpop.eup %250 }
 0x18f   :  { %v144_v18 = vsel %vm143_vm2, %v251_v17, 0.0 }
 0x190   :  { %145 = vadd.xlane.f32.xlu0 %v144_v18  ;;  %v177_v20 = vrot.slane %v144_v18, 4 }
 0x192   :  { %v178_v21 = vadd.f32 %v177_v20, %v144_v18 }
 0x194   :  { %v179_v23 = vrot.slane %v178_v21, 2  ;;  %166 = vadd.xlane.f32.xlu0 %v165_v22 }
 0x196   :  { %v180_v24 = vadd.f32 %v179_v23, %v178_v21 }
 0x198   :  { %v181_v25 = vrot.slane %v180_v24, 1 }
 0x19a   :  { %v182_v26 = vadd.f32 %v181_v25, %v180_v24 }
 0x19c   :  { %184 = vst.msk [vmem:[#allocation8] sm:$0x1] %vm183_vm4, %v182_v26 }
 0x219   :  { %v146_v27 = vpop.xlane.xlu0 %145 }
 0x21a   :  { %v147_v28 = vmax.f32 %v146_v27, 1e-30 }
 0x21c   :  { %252 = vlog2.f32 %v147_v28 }
 0x229   :  { %v253_v29 = vpop.eup %252 }
 0x22a   :  { %v149_v30 = vmul.f32 0.6931472, %v253_v29 }
 0x22c   :  { %v150_v31 = vadd.f32 %v149_v30, %v53_v7 }
 0x22e   :  { %v152_v32 = vsel %vm151_vm3, %v150_v31, 0.0 }
 0x22f   :  { %153 = vadd.xlane.f32.xlu1 %v152_v32 }
 0x230   :  { %305 = shalt.err (!%p302_p0)
}
 0x231   :  { %194 = dma.vmem_to_hbm [thread:$0]  %s192_s28, 16, %s426_s3, [#allocation5]   ;;  %v167_v33 = vpop.xlane.xlu0 %166  ;;  %vm163_vm5 = vcmask 0  }
 0x232   :  { %v168_v34 = vrot.slane %v167_v33, 4  ;;  %s367_s8 = smov [#allocation9]   ;;  %s368_s10 = smov [#allocation11]  }
 0x233   :  { %s201_s9 = sshll.u32 %s367_s8, 4  ;;  %s211_s3 = sshll.u32 %s368_s10, 4  ;;  %s202_s9 = int_to_ptr.vmem [resolvable:$true] %s201_s9  ;;  %s212_s3 = int_to_ptr.vmem [resolvable:$true] %s211_s3 }
 0x234   :  { %v169_v35 = vadd.f32 %v168_v34, %v167_v33  ;;  %s314_s13 = scalar_lea.vmem %s202_s9, 16  ;;  %s318_s14 = scalar_lea.vmem %s202_s9, 32 }
 0x235   :  { %p315_p1 = scmp.ne.s32.totalorder %s202_s9, %s314_s13  ;;  %p319_p2 = scmp.lt.s32.totalorder %s202_s9, %s202_s9 }
 0x236   :  { %v170_v36 = vrot.slane %v169_v35, 2  ;;  %p320_p3 = scmp.lt.s32.totalorder %s318_s14, %s314_s13 }
 0x238   :  { %v171_v40 = vadd.f32 %v170_v36, %v169_v35  ;;  %p321_p4 = por %p320_p3, %p319_p2 }
 0x23a   :  { %v172_v43 = vrot.slane %v171_v40, 1  ;;  %p322_p5 = pnand %p321_p4, %p315_p1 }
 0x23c   :  { %v173_v46 = vadd.f32 %v172_v43, %v171_v40 }
 0x2b8   :  { %v154_v37 = vpop.xlane.xlu1 %153 }
 0x2b9   :  { %v155_v38 = vrot.slane %v154_v37, 4 }
 0x2bb   :  { %v156_v39 = vadd.f32 %v155_v38, %v154_v37 }
 0x2bd   :  { %v157_v41 = vrot.slane %v156_v39, 2 }
 0x2bf   :  { %v158_v42 = vadd.f32 %v157_v41, %v156_v39 }
 0x2c1   :  { %v159_v44 = vrot.slane %v158_v42, 1 }
 0x2c3   :  { %v160_v45 = vadd.f32 %v159_v44, %v158_v42 }
 0x2c5   :  { %237 = vpush %v160_v45 }
 0x2c6   :  { %239 = vpush %v173_v46 }
 0x2f6   :  { %s238_s11 = spop %237 }
 0x2f7   :  { %v162_v47 = vstv %s238_s11  ;;  %s240_s12 = spop %239 }
 0x2f8   :  { %v175_v48 = vstv %s240_s12  ;;  %164 = vst.msk [vmem:[#allocation9] sm:$0x1] %vm163_vm5, %v162_v47 }
 0x2f9   :  { %176 = vst.msk [vmem:[#allocation11] sm:$0x1] %vm163_vm5, %v175_v48 }
 0x2fa   :  { %325 = shalt.err (!%p322_p5)
}
 0x2fb   :  { %204 = dma.vmem_to_hbm [thread:$0]  %s202_s9, 16, %s427_s4, [#allocation10]  }
 0x2fc   :  { %s334_s17 = scalar_lea.vmem %s212_s3, 16  ;;  %s338_s18 = scalar_lea.vmem %s212_s3, 32 }
 0x2fd   :  { %p335_p6 = scmp.ne.s32.totalorder %s212_s3, %s334_s17  ;;  %p339_p7 = scmp.lt.s32.totalorder %s212_s3, %s212_s3 }
 0x2fe   :  { %p340_p8 = scmp.lt.s32.totalorder %s338_s18, %s334_s17 }
 0x300   :  { %p341_p9 = por %p340_p8, %p339_p7 }
 0x302   :  { %p342_p10 = pnand %p341_p9, %p335_p6 }
 0x304   :  { %345 = shalt.err (!%p342_p10)
}
 0x305   :  { %214 = dma.vmem_to_hbm [thread:$0]  %s212_s3, 16, %s428_s5, [#allocation10]  }
 0x306   :  { %358 = dma.done.wait [#allocation5], 16  }
 0x307   :  { %359 = vsyncadd [#allocation5], 4294967280 }
 0x308   :  { %360 = dma.done.wait [#allocation10], 32  }
 0x309   :  { %361 = vsyncadd [#allocation10], 4294967264 }
 0x30a   :  { %224 = vsyncpa [#allocation4], 1 }
 0x30b   :  { %225 = vsyncpa [#allocation7], 1 }
 0x30c   :  { %226 = vsyncpa [#allocation5], 1 }
 0x30d   :  { %227 = vsyncpa [#allocation10], 1 }

</bundles_post_ra>
